<compile_context>
chip_gen: v7x
topology: tpu7x:2x2x1
jax: 0.10.0
libtpu: 0.0.40
codegen_flags: <defaults>
</compile_context>

<pallas_src>
import math

import jax
import jax.numpy as jnp
from jax.experimental import pallas as pl
from jax.experimental.pallas import tpu as pltpu


def _mcl2_kernel(x_ref, w_ref, o_ref):
    # x_ref: (TR, F) rows of the flattened (B*C, F) input
    # w_ref: (TR, F) weights pre-tiled so row r uses channel (r % C)
    # o_ref: (1, TR) lane-dense per-row sums
    x = x_ref[...].astype(jnp.float32)      # f32 accumulation (bf16-safe)
    w = w_ref[...].astype(jnp.float32)
    s = jnp.sum(x * w, axis=-1)             # VPU multiply + XLU lane reduce
    o_ref[...] = s[None, :].astype(o_ref.dtype)


def multi_channel_linear2(x, weights, *, tile_rows=None):
    """x: (B, C, F), weights: (C, F) -> (B, C, 1) (same dtype as x)."""
    B, C, F = x.shape
    assert weights.shape == (C, F)

    itemsize = jnp.dtype(x.dtype).itemsize
    num_rows = B * C
    x2 = x.reshape(num_rows, F)             # free, contiguous reshape

    # Row-tile base: multiple of C (weight alignment for every block) and of
    # 128 (dense output lanes; also a multiple of the 8/16/32 sublane packing).
    base = (C * 128) // math.gcd(C, 128)

    if num_rows <= base:
        # Single full block: every block dim equals the full array dim.
        tr = num_rows
    else:
        if tile_rows is None:
            # dtype-aware VMEM accounting per block row:
            #   x double-buffer (2*itemsize) + resident tiled weights
            #   (2*itemsize) + in-kernel f32 upcasts of x, w and the product
            #   (3 * 4 bytes).
            per_row_bytes = F * (4 * itemsize + 12)
            budget = 24 * 1024 * 1024       # accounted peak target (all gens)
            tr = max(base, ((budget // max(per_row_bytes, 1)) // base) * base)
        else:
            tr = max(base, (tile_rows // base) * base)
        # Cap so the grid has >= 2 steps when possible (v7x megacore split).
        max_tr = (num_rows // base) * base
        if num_rows >= 2 * base:
            max_tr = min(max_tr, max(base, ((num_rows // 2) // base) * base))
        tr = min(tr, max_tr)
    # TODO(synk): if C*F per block ever exceeds the VMEM budget (huge
    # in_features), add an inner "arbitrary" F grid axis with an f32
    # accumulator scratch instead of growing the block.

    # Weights tiled once wrapper-side (tiny vs. x traffic), then VMEM-resident.
    w_rows = jnp.tile(weights, (tr // C, 1))          # (tr, F)

    grid = (pl.cdiv(num_rows, tr),)

    cost = pl.CostEstimate(
        flops=2 * num_rows * F,
        transcendentals=0,
        bytes_accessed=(num_rows * F + tr * F + num_rows) * itemsize,
    )

    out_row = pl.pallas_call(
        _mcl2_kernel,
        out_shape=jax.ShapeDtypeStruct((1, num_rows), x.dtype),
        grid_spec=pltpu.PrefetchScalarGridSpec(
            num_scalar_prefetch=0,
            grid=grid,
            in_specs=[
                # x rows: streamed, double-buffered (partial last block OK).
                pl.BlockSpec((tr, F), lambda r: (r, 0)),
                # tiled weights: constant block index -> resident in VMEM.
                pl.BlockSpec((tr, F), lambda r: (0, 0)),
            ],
            # Lane-dense output slab (1, tr); reshaped to (B, C, 1) outside.
            out_specs=pl.BlockSpec((1, tr), lambda r: (0, r)),
        ),
        compiler_params=pltpu.CompilerParams(
            # Row blocks are independent -> shard across TCs on v7x megacore.
            dimension_semantics=("parallel",),
            # Explicit limit: covers the accounted peak with headroom, and
            # stays under v7x's 64 MiB physical VMEM per TensorCore.
            vmem_limit_bytes=48 * 1024 * 1024,
        ),
        cost_estimate=cost,
    )(x2, w_rows)

    return out_row.reshape(B, C, 1)


if __name__ == "__main__":
    # Small demo shapes consistent with the module: batch=2, channels=4,
    # in_features=32.
    B, C, F = 2, 4, 32

    key = jax.random.PRNGKey(0)
    kx, kw = jax.random.split(key)
    x = jax.random.normal(kx, (B, C, F), dtype=jnp.float32)
    # The torch module initializes weights to zeros; use deterministic nonzero
    # weights here so the multiply/reduce path is actually exercised.
    weights = jax.random.normal(kw, (C, F), dtype=jnp.float32)

    out = jax.block_until_ready(multi_channel_linear2(x, weights))
    ref = jnp.sum(x * weights[None, :, :], axis=2)[:, :, None]
    assert out.shape == (B, C, 1)
    assert jnp.allclose(out, ref, atol=1e-5, rtol=1e-5)

    # Zero-init case matching nn.init.zeros_ exactly.
    out_zero = jax.block_until_ready(
        multi_channel_linear2(x, jnp.zeros((C, F), jnp.float32))
    )
    assert jnp.allclose(out_zero, jnp.zeros((B, C, 1), jnp.float32))

    # Also exercise the tiled path: multi-step grid + partial last block + bf16.
    Bb, Cb, Fb = 37, 4, 256
    xb = jax.random.normal(kx, (Bb, Cb, Fb), dtype=jnp.bfloat16)
    wb = jax.random.normal(kw, (Cb, Fb), dtype=jnp.bfloat16)
    outb = jax.block_until_ready(multi_channel_linear2(xb, wb))
    refb = jnp.sum(
        xb.astype(jnp.float32) * wb.astype(jnp.float32)[None, :, :], axis=2
    )[:, :, None]
    assert outb.shape == (Bb, Cb, 1)
    assert jnp.allclose(outb.astype(jnp.float32), refb, atol=0.5, rtol=0.1)

    print("KERNEL_OK")
</pallas_src>

<mosaic_0001>
module attributes {stable_mosaic.version = 11 : i64} {
  func.func @_mcl2_kernel(%arg0: i32, %arg1: memref<8x32xf32, #tpu.memory_space<vmem>>, %arg2: memref<8x32xf32, #tpu.memory_space<vmem>>, %arg3: memref<1x8xf32, #tpu.memory_space<vmem>>) attributes {dimension_semantics = [#tpu.dimension_semantics<parallel>], iteration_bounds = array<i64: 1>, scalar_prefetch = 0 : i64, scratch_operands = 0 : i64, tpu.core_type = #tpu.core_type<tc>, window_params = [{transform_indices = @transform_0, window_bounds = array<i64: 8, 32>}, {pipeline_mode = #tpu.pipeline_mode<synchronous>, transform_indices = @transform_1, window_bounds = array<i64: 8, 32>}, {transform_indices = @transform_2, window_bounds = array<i64: 1, 8>}]} {
    %c0 = arith.constant 0 : index
    %c0_0 = arith.constant 0 : index
    %0 = vector.load %arg1[%c0, %c0_0] : memref<8x32xf32, #tpu.memory_space<vmem>>, vector<8x32xf32>
    %c0_1 = arith.constant 0 : index
    %c0_2 = arith.constant 0 : index
    %1 = vector.load %arg2[%c0_1, %c0_2] : memref<8x32xf32, #tpu.memory_space<vmem>>, vector<8x32xf32>
    %2 = arith.mulf %0, %1 : vector<8x32xf32>
    %cst = arith.constant dense<0.000000e+00> : vector<8xf32>
    %3 = vector.multi_reduction <add>, %2, %cst [1] : vector<8x32xf32> to vector<8xf32>
    %4 = vector.shape_cast %3 : vector<8xf32> to vector<1x8xf32>
    %c0_3 = arith.constant 0 : index
    %c0_4 = arith.constant 0 : index
    %5 = vector.load %arg3[%c0_3, %c0_4] : memref<1x8xf32, #tpu.memory_space<vmem>>, vector<1x8xf32>
    tpu.vector_store %arg3[%c0_3, %c0_4], %4 {strides = array<i32>} : memref<1x8xf32, #tpu.memory_space<vmem>>, vector<1x8xf32>,
    return
  }
  func.func @transform_0(%arg0: i32) -> (i32, i32) {
    %c0_i32 = arith.constant 0 : i32
    %c0_i32_0 = arith.constant 0 : i32
    return %arg0, %c0_i32 : i32, i32
  }
  func.func @transform_1(%arg0: i32) -> (i32, i32) {
    %c0_i32 = arith.constant 0 : i32
    %c0_i32_0 = arith.constant 0 : i32
    %c0_i32_1 = arith.constant 0 : i32
    return %c0_i32, %c0_i32_0 : i32, i32
  }
  func.func @transform_2(%arg0: i32) -> (i32, i32) {
    %c0_i32 = arith.constant 0 : i32
    %c0_i32_0 = arith.constant 0 : i32
    return %c0_i32, %arg0 : i32, i32
  }
}

</mosaic_0001>

<bundles_post_ra>
// kernel: tpu_custom_call.1
= control target key start
LH: loop header
LB: loop body
LE: loop exit
PB: predicated region body
PF: predicated region fallthrough
CT: control target
= control target key end

     0   :  { %7 = vsyncpa [#allocation3], 0  ;;  %s198_s0 = inlined_call_operand.hbm [shape: f32[8,32], index: 0, kind: input, shape index: {}]   ;;  %s199_s1 = inlined_call_operand.hbm [shape: f32[8,32], index: 1, kind: input, shape index: {}]   ;;  %s200_s2 = inlined_call_operand.hbm [shape: f32[1,8], index: 2, kind: output, shape index: {}]  }
   0x1   :  { %8 = vsyncpa [#allocation6], 0 }
   0x2   :  { %9 = vsyncpa [#allocation4], 0  ;;  %s144_s9 = smov [#allocation2]   ;;  %s145_s11 = smov [#allocation5]  }
   0x3   :  { %s16_s10 = sshll.u32 %s144_s9, 4  ;;  %s26_s12 = sshll.u32 %s145_s11, 4  ;;  %s17_s10 = int_to_ptr.vmem [resolvable:$true] %s16_s10  ;;  %s27_s12 = int_to_ptr.vmem [resolvable:$true] %s26_s12 }
   0x4   :  { %s72_s15 = scalar_lea.hbm %s198_s0, 128 }
   0x5   :  { %p73_p0 = scmp.ne.s32.totalorder %s198_s0, %s72_s15  ;;  %p76_p1 = scmp.lt.u32.totalorder %s72_s15, %s198_s0 }
   0x7   :  { %p78_p2 = pnand %p76_p1, %p73_p0 }
   0x9   :  { %81 = shalt.err (!%p78_p2)
}
   0xa   :  { %s82_s20 = scalar_lea.vmem %s17_s10, 128  ;;  %p87_p4 = scmp.lt.s32.totalorder %s17_s10, %s17_s10 }
   0xb   :  { %p83_p3 = scmp.ne.s32.totalorder %s17_s10, %s82_s20  ;;  %p88_p5 = scmp.lt.s32.totalorder %s82_s20, %s82_s20 }
   0xd   :  { %p89_p6 = por %p88_p5, %p87_p4 }
   0xf   :  { %p90_p7 = pnand %p89_p6, %p83_p3 }
  0x11   :  { %93 = shalt.err (!%p90_p7)
}
  0x12   :  { %19 = dma.hbm_to_vmem [thread:$0]  %s198_s0, 128, %s17_s10, [#allocation3]  }
  0x13   :  { %s94_s25 = scalar_lea.hbm %s199_s1, 128 }
  0x14   :  { %p95_p8 = scmp.ne.s32.totalorder %s199_s1, %s94_s25  ;;  %p98_p9 = scmp.lt.u32.totalorder %s94_s25, %s199_s1 }
  0x16   :  { %p100_p10 = pnand %p98_p9, %p95_p8 }
  0x18   :  { %103 = shalt.err (!%p100_p10)
}
  0x19   :  { %s104_s30 = scalar_lea.vmem %s27_s12, 128  ;;  %p109_p12 = scmp.lt.s32.totalorder %s27_s12, %s27_s12 }
  0x1a   :  { %p105_p11 = scmp.ne.s32.totalorder %s27_s12, %s104_s30  ;;  %p110_p13 = scmp.lt.s32.totalorder %s104_s30, %s104_s30 }
  0x1c   :  { %p111_p0 = por %p110_p13, %p109_p12 }
  0x1e   :  { %p112_p1 = pnand %p111_p0, %p105_p11 }
  0x20   :  { %115 = shalt.err (!%p112_p1)
}
  0x21   :  { %29 = dma.hbm_to_vmem [thread:$0]  %s199_s1, 128, %s27_s12, [#allocation6]  }
  0x22   :  { %138 = dma.done.wait [#allocation3], 128  }
  0x23   :  { %139 = vsyncadd [#allocation3], 4294967168 }
  0x24   :  { %140 = dma.done.wait [#allocation6], 128  }
  0x25   :  { %141 = vsyncadd [#allocation6], 4294967168  ;;  %v36_v0 = vld [vmem:[#allocation2] sm:$0xff]  ;;  %v37_v1 = vld [vmem:[#allocation5] sm:$0xff]  ;;  %vm39_vm0 = vcmask 261120   ;;  %v44_v4 = vlaneseq  ;;  %s146_s4 = smov [#allocation7]  }
  0x26   :  { %v38_v2 = vmul.f32 %v37_v1, %v36_v0  ;;  %s59_s5 = sshll.u32 %s146_s4, 4  ;;  %vm51_vm1 = vcmask 57344   ;;  %s60_s5 = int_to_ptr.vmem [resolvable:$true] %s59_s5 }
  0x27   :  { %v45_v5 = vand.u32 127, %v44_v4  ;;  %v47_v6 = vshrl.u32 %v44_v4, 7  ;;  %s116_s1 = scalar_lea.vmem %s60_s5, 16  ;;  %s120_s6 = scalar_lea.vmem %s60_s5, 32 }
  0x28   :  { %v40_v3 = vsel %vm39_vm0, %v38_v2, 0.0  ;;  %p117_p2 = scmp.ne.s32.totalorder %s60_s5, %s116_s1  ;;  %p121_p3 = scmp.lt.s32.totalorder %s60_s5, %s60_s5 }
  0x29   :  { %41 = vadd.xlane.f32.xlu0 %v40_v3  ;;  %v48_v7 = vsub.s32 %v45_v5, %v47_v6  ;;  %p122_p4 = scmp.lt.s32.totalorder %s120_s6, %s116_s1 }
  0x2b   :  { %p123_p5 = por %p122_p4, %p121_p3 }
  0x2d   :  { %p124_p6 = pnand %p123_p5, %p117_p2 }
  0xb6   :  { %v42_v8 = vpop.xlane.xlu0 %41 }
  0xb7   :  { %v49_v9 = vrot.slane %v42_v8, %v48_v7 }
  0xb9   :  { %52 = vst.msk [vmem:[#allocation7] sm:$0x1] %vm51_vm1, %v49_v9 }
  0xba   :  { %127 = shalt.err (!%p124_p6)
}
  0xbb   :  { %s128_s9 = scalar_lea.hbm %s200_s2, 16 }
  0xbc   :  { %p129_p7 = scmp.ne.s32.totalorder %s200_s2, %s128_s9  ;;  %p132_p8 = scmp.lt.u32.totalorder %s128_s9, %s200_s2 }
  0xbe   :  { %p134_p9 = pnand %p132_p8, %p129_p7 }
  0xc0   :  { %137 = shalt.err (!%p134_p9)
}
  0xc1   :  { %62 = dma.vmem_to_hbm [thread:$0]  %s60_s5, 16, %s200_s2, [#allocation4]  }
  0xc2   :  { %142 = dma.done.wait [#allocation4], 16  }
  0xc3   :  { %143 = vsyncadd [#allocation4], 4294967280 }
  0xc4   :  { %66 = vsyncpa [#allocation3], 1 }
  0xc5   :  { %67 = vsyncpa [#allocation6], 1 }
  0xc6   :  { %68 = vsyncpa [#allocation4], 1 }

</bundles_post_ra>
